<compile_context>
chip_gen: v6e
topology: v6e:2x2x1
jax: 0.10.0
libtpu: 0.0.40
codegen_flags: <defaults>
</compile_context>

<pallas_src>
import functools

import numpy as np
import jax
import jax.numpy as jnp
from jax.experimental import pallas as pl
from jax.experimental.pallas import tpu as pltpu


# ----------------------------- small helpers --------------------------------

def _round_up(n, m):
    return -(-n // m) * m


def _divisors(n):
    out = []
    d = 1
    while d * d <= n:
        if n % d == 0:
            out.append(d)
            if d != n // d:
                out.append(n // d)
        d += 1
    return sorted(out)


@functools.lru_cache(maxsize=None)
def _vmem_budget():
    """(tile-sizing budget, scoped-VMEM limit) in bytes, generation-aware."""
    cap = 64 * 1024 * 1024                       # conservative default (v7x-sized)
    try:
        cap = int(pltpu.get_tpu_info().vmem_capacity_bytes)
    except Exception:
        pass
    limit = (cap * 3) // 4                       # raised scoped limit (v5e default ~16 MiB)
    budget = limit // 2                          # double-buffered working-set target
    return budget, limit


def _choose_fold(M, W, reduced_W, target_out_lanes, max_in_lanes):
    """Pick g | M so the folded row (g*W lanes -> g*reduced_W out lanes) is lane-dense."""
    best_g, best_key = 1, None
    for g in _divisors(M):
        lin, lout = g * W, g * reduced_W
        if g > 1 and lin > max_in_lanes:
            continue
        rows = M // g
        key = (
            rows >= 8,                               # keep sublanes dense
            lout % 128 == 0 and lout >= 128,         # unmasked full-lane output stores
            -abs(lout - target_out_lanes),           # close to the target lane width
            rows,                                    # more rows -> more grid steps
        )
        if best_key is None or key > best_key:
            best_key, best_g = key, g
    return best_g


def _choose_tile_m(mg, lin, lout, in_itemsize, p_bytes, budget):
    """Sublane tile over the folded-row axis; lane-padded, P-aware VMEM math."""
    per_row = 2 * (_round_up(lin, 128) * in_itemsize + _round_up(lout, 128) * 4)
    avail = max(budget - p_bytes, 8 * per_row)
    tile = avail // per_row
    tile = min(tile, 2048)                           # ~1-2 MiB/step already sits at roofline
    if mg > 8:
        # Keep >= 2 grid steps so the "parallel" axis can split across v7x's two TCs.
        tile = min(tile, _round_up(-(-mg // 2), 8))
    tile = max(8, (tile // 8) * 8)
    if tile >= mg:
        tile = mg                                    # full-extent block (always legal)
    return int(tile)


# ------------------------------- kernels -------------------------------------

def _pool_even_odd_kernel(x_ref, o_ref):
    """kernel==2, even W: out = (even lanes + odd lanes) * 0.5  (pure VPU, exact f32)."""
    x = x_ref[...]
    if x.dtype != jnp.float32:
        x = x.astype(jnp.float32)                    # in-register; VMEM block stays narrow
    even = x[:, 0::2]
    odd = x[:, 1::2]
    o_ref[...] = ((even + odd) * 0.5).astype(o_ref.dtype)


def _pool_matmul_kernel(x_ref, p_ref, o_ref, *, precision):
    """General windowed mean as x_tile @ P (block-diagonal pooling matrix)."""
    x = x_ref[...]
    p = p_ref[...]
    if x.dtype != p.dtype:
        x = x.astype(p.dtype)
    o_ref[...] = jnp.dot(
        x, p, preferred_element_type=jnp.float32, precision=precision
    ).astype(o_ref.dtype)


@functools.lru_cache(maxsize=None)
def _even_odd_path_ok():
    """Compile-and-verify probe for the lane-strided even/odd fast path."""
    try:
        a = (np.arange(12 * 256, dtype=np.float32).reshape(12, 256) * 1e-3) - 1.5
        out = pl.pallas_call(
            _pool_even_odd_kernel,
            out_shape=jax.ShapeDtypeStruct((12, 128), jnp.float32),
            grid=(2,),
            in_specs=[pl.BlockSpec((8, 256), lambda i: (i, 0))],
            out_specs=pl.BlockSpec((8, 128), lambda i: (i, 0)),
            compiler_params=pltpu.CompilerParams(dimension_semantics=("parallel",)),
        )(jnp.asarray(a))
        out = np.asarray(jax.block_until_ready(out))
        ref = (a[:, 0::2] + a[:, 1::2]) * 0.5
        return bool(np.allclose(out, ref, rtol=1e-6, atol=1e-6))
    except Exception:
        return False


def _fold_pool_matrix(W, reduced_W, kernel, g, dtype):
    """Block-diagonal (g*W, g*reduced_W) matrix; column averages its window."""
    base = np.zeros((W, reduced_W), dtype=np.float32)
    for i in range(reduced_W):
        start = i * kernel
        end = min(W, (i + 1) * kernel)               # short tail window (odd W, kernel==2)
        base[start:end, i] = 1.0 / (end - start)
    P = np.zeros((g * W, g * reduced_W), dtype=np.float32)
    for j in range(g):
        P[j * W:(j + 1) * W, j * reduced_W:(j + 1) * reduced_W] = base
    return P.astype(dtype)


# ------------------------------ entry point -----------------------------------

@functools.lru_cache(maxsize=None)
def _build_pool(shape, dtype_name, kernel):
    """Static planning (fold, tiles, path selection) happens once per config."""
    B, C, N, W = shape
    in_dtype = np.dtype(dtype_name)
    if kernel == 2 and W % 2 == 1:
        reduced_W = (W + 1) // 2
    else:
        reduced_W = W // kernel

    if reduced_W == 0:
        return jax.jit(lambda x: jnp.zeros((B, C, N, 0), jnp.float32))

    M = B * C * N
    budget, vmem_limit = _vmem_budget()
    in_itemsize = in_dtype.itemsize
    compiler_params = pltpu.CompilerParams(
        dimension_semantics=("parallel",),           # lets v7x shard M across both TCs
        vmem_limit_bytes=int(vmem_limit),
    )

    # ---------- hot path: kernel == 2, even W -> pure-VPU even/odd pooling ----------
    use_fast = (kernel == 2) and (W % 2 == 0)
    if use_fast:
        g = _choose_fold(M, W, reduced_W, target_out_lanes=512, max_in_lanes=4096)
        lin, lout = g * W, g * reduced_W
        use_fast = (lout % 128 == 0) and _even_odd_path_ok()

    if use_fast:
        mg = M // g
        tile_m = _choose_tile_m(mg, lin, lout, in_itemsize, p_bytes=0, budget=budget)

        def impl(x):
            out_f = pl.pallas_call(
                _pool_even_odd_kernel,
                out_shape=jax.ShapeDtypeStruct((mg, lout), jnp.float32),
                grid=(pl.cdiv(mg, tile_m),),
                in_specs=[pl.BlockSpec((tile_m, lin), lambda i: (i, 0))],
                out_specs=pl.BlockSpec((tile_m, lout), lambda i: (i, 0)),
                compiler_params=compiler_params,
            )(x.reshape(mg, lin))                    # free reshape of contiguous data
            return out_f.reshape(B, C, N, reduced_W)

        return jax.jit(impl)

    # ---------- general path: folded block-diagonal matmul on the MXU ----------
    # TODO(synk): for very large W, add a second grid axis tiling W in kernel*128
    # chunks so tile_m stays >= 512 rows and P stays O(chunk^2).
    g = _choose_fold(M, W, reduced_W, target_out_lanes=128, max_in_lanes=2048)
    lin, lout = g * W, g * reduced_W
    mg = M // g

    pow2_kernel = (kernel & (kernel - 1)) == 0
    bf16_direct = (dtype_name == "bfloat16") and pow2_kernel   # 1/kernel exact in bf16
    p_dtype = np.dtype("bfloat16") if bf16_direct else np.dtype("float32")
    precision = (jax.lax.Precision.DEFAULT if bf16_direct
                 else jax.lax.Precision.HIGHEST)               # exact f32 fallback
    P_np = _fold_pool_matrix(W, reduced_W, kernel, g, p_dtype)

    p_bytes = 2 * _round_up(lin, 8) * _round_up(lout, 128) * p_dtype.itemsize
    tile_m = _choose_tile_m(mg, lin, lout, in_itemsize, p_bytes=p_bytes, budget=budget)

    def impl(x):
        P = jnp.asarray(P_np)
        out_f = pl.pallas_call(
            functools.partial(_pool_matmul_kernel, precision=precision),
            out_shape=jax.ShapeDtypeStruct((mg, lout), jnp.float32),
            grid=(pl.cdiv(mg, tile_m),),
            in_specs=[
                pl.BlockSpec((tile_m, lin), lambda i: (i, 0)),
                pl.BlockSpec((lin, lout), lambda i: (0, 0)),   # constant block, fetched once
            ],
            out_specs=pl.BlockSpec((tile_m, lout), lambda i: (i, 0)),
            compiler_params=compiler_params,
        )(x.reshape(mg, lin), P)
        return out_f.reshape(B, C, N, reduced_W)

    return jax.jit(impl)


def vn_mean_pool(x, kernel=2):
    """Pallas implementation of VNMeanPool.forward: (B, C, N, W) -> (B, C, N, rW) f32."""
    impl = _build_pool(tuple(int(d) for d in x.shape), np.dtype(x.dtype).name, int(kernel))
    return impl(x)


# ------------------------------- reference ------------------------------------

def _reference(x, kernel=2):
    """Pure-JAX reference mirroring the PyTorch loop."""
    B, C, N, W = x.shape
    if kernel == 2 and W % 2 == 1:
        reduced_W = (W + 1) // 2
    else:
        reduced_W = W // kernel
    xf = x.astype(jnp.float32)
    cols = [xf[:, :, :, i * kernel:(i + 1) * kernel].mean(axis=3)
            for i in range(reduced_W)]
    return jnp.stack(cols, axis=3)


if __name__ == "__main__":
    key = jax.random.PRNGKey(0)
    B, C, N, W = 2, 4, 16, 16
    x = jax.random.normal(key, (B, C, N, W), dtype=jnp.float32)

    out = jax.block_until_ready(vn_mean_pool(x, kernel=2))
    ref = _reference(x, kernel=2)
    assert out.shape == (B, C, N, W // 2), out.shape
    assert out.dtype == jnp.float32
    assert jnp.allclose(out, ref, atol=1e-5, rtol=1e-5), "mismatch vs reference (even W)"

    # Odd-W branch of the PyTorch code path (short tail window) -> matmul fallback.
    x_odd = jax.random.normal(jax.random.PRNGKey(1), (B, C, N, 9), jnp.float32)
    out_odd = jax.block_until_ready(vn_mean_pool(x_odd, kernel=2))
    ref_odd = _reference(x_odd, kernel=2)
    assert out_odd.shape == (B, C, N, 5), out_odd.shape
    assert jnp.allclose(out_odd, ref_odd, atol=1e-5, rtol=1e-5), "mismatch vs reference (odd W)"

    print("KERNEL_OK")
</pallas_src>

<mosaic_0001>
module attributes {stable_mosaic.version = 11 : i64} {
  func.func @_pool_matmul_kernel(%arg0: i32, %arg1: memref<8x256xf32, #tpu.memory_space<vmem>>, %arg2: memref<256x128xf32, #tpu.memory_space<vmem>>, %arg3: memref<8x128xf32, #tpu.memory_space<vmem>>) attributes {dimension_semantics = [#tpu.dimension_semantics<parallel>], iteration_bounds = array<i64: 1>, scalar_prefetch = 0 : i64, scratch_operands = 0 : i64, tpu.core_type = #tpu.core_type<tc>, window_params = [{transform_indices = @transform_0, window_bounds = array<i64: 8, 256>}, {pipeline_mode = #tpu.pipeline_mode<synchronous>, transform_indices = @transform_1, window_bounds = array<i64: 256, 128>}, {transform_indices = @transform_2, window_bounds = array<i64: 8, 128>}]} {
    %c0 = arith.constant 0 : index
    %c0_0 = arith.constant 0 : index
    %0 = vector.load %arg1[%c0, %c0_0] : memref<8x256xf32, #tpu.memory_space<vmem>>, vector<8x256xf32>
    %c0_1 = arith.constant 0 : index
    %c0_2 = arith.constant 0 : index
    %1 = vector.load %arg2[%c0_1, %c0_2] : memref<256x128xf32, #tpu.memory_space<vmem>>, vector<256x128xf32>
    %cst = arith.constant dense<0.000000e+00> : vector<8x128xf32>
    %2 = tpu.matmul %0, %1, %cst {dimension_numbers = #tpu.dot_dimension_numbers<[1], [0], [0], [1], [0, 0, 1, 1], [], []>, precision = #tpu.contract_precision<fp32>} : vector<8x256xf32>, vector<256x128xf32>, vector<8x128xf32> -> vector<8x128xf32>
    %c0_3 = arith.constant 0 : index
    %c0_4 = arith.constant 0 : index
    %3 = vector.load %arg3[%c0_3, %c0_4] : memref<8x128xf32, #tpu.memory_space<vmem>>, vector<8x128xf32>
    tpu.vector_store %arg3[%c0_3, %c0_4], %2 {strides = array<i32>} : memref<8x128xf32, #tpu.memory_space<vmem>>, vector<8x128xf32>,
    return
  }
  func.func @transform_0(%arg0: i32) -> (i32, i32) {
    %c0_i32 = arith.constant 0 : i32
    %c0_i32_0 = arith.constant 0 : i32
    return %arg0, %c0_i32 : i32, i32
  }
  func.func @transform_1(%arg0: i32) -> (i32, i32) {
    %c0_i32 = arith.constant 0 : i32
    %c0_i32_0 = arith.constant 0 : i32
    %c0_i32_1 = arith.constant 0 : i32
    return %c0_i32, %c0_i32_0 : i32, i32
  }
  func.func @transform_2(%arg0: i32) -> (i32, i32) {
    %c0_i32 = arith.constant 0 : i32
    %c0_i32_0 = arith.constant 0 : i32
    return %arg0, %c0_i32 : i32, i32
  }
}

</mosaic_0001>

<bundles_post_ra>
// kernel: impl.1
= control target key start
LH: loop header
LB: loop body
LE: loop exit
PB: predicated region body
PF: predicated region fallthrough
CT: control target
= control target key end

     0   :  { %7 = vsyncpa [#allocation3], 0  ;;  %s1162_s9 = smov [#allocation2]   ;;  %s1794_s0 = inlined_call_operand.vmem [shape: f32[8,256], index: 0, kind: input, shape index: {}]   ;;  %s1795_s1 = inlined_call_operand.hbm [shape: f32[256,128], index: 1, kind: input, shape index: {}]   ;;  %s1796_s2 = inlined_call_operand.vmem [shape: f32[8,128], index: 2, kind: output, shape index: {}]  }
   0x1   :  { %s15_s10 = sshll.u32 %s1162_s9, 4  ;;  %s16_s10 = int_to_ptr.vmem [resolvable:$true] %s15_s10 }
   0x2   :  { %s1148_s11 = scalar_lea.vmem %s16_s10, 4096  ;;  %p1153_p1 = scmp.lt.s32.totalorder %s16_s10, %s16_s10 }
   0x3   :  { %p1149_p0 = scmp.ne.s32.totalorder %s16_s10, %s1148_s11  ;;  %p1154_p2 = scmp.lt.s32.totalorder %s1148_s11, %s1148_s11 }
   0x5   :  { %p1155_p3 = por %p1154_p2, %p1153_p1 }
   0x7   :  { %p1156_p4 = pnand %p1155_p3, %p1149_p0 }
   0x9   :  { %1159 = shalt.err (!%p1156_p4)
}
   0xa   :  { %s1163_s12 = smov 128   ;;  %s1164_s13 = smov 8  }
   0xb   :  { %21 = dma.hbm_to_vmem [thread:$0]  %s1795_s1, 4096, %s16_s10, [#allocation3], %s1163_s12, %s1163_s12, %s1164_s13  }
   0xc   :  { %1160 = dma.done.wait [#allocation3], 4096  }
   0xd   :  { %1161 = vsyncadd [#allocation3], 4294963200  ;;  %v58_v0 = vld [vmem:[#allocation2 + $0xf8] sm:$0xff]  ;;  %v57_v2 = vld [vmem:[#allocation2 + $0xf0] sm:$0xff] }
   0xe   :  { %v42_v1 = vld [vmem:[#allocation2 + $0x78] sm:$0xff]  ;;  %v1183_v3 = vand.u32 4294901760, %v58_v0  ;;  %v1187_v5 = vand.u32 4294901760, %v57_v2  ;;  %v41_v6 = vld [vmem:[#allocation2 + $0x70] sm:$0xff]  ;;  %v56_v7 = vld [vmem:[#allocation2 + $0xe8] sm:$0xff] }
   0xf   :  { %v1185_v4 = vand.u32 4294901760, %v42_v1  ;;  %v40_v8 = vld [vmem:[#allocation2 + $0x68] sm:$0xff]  ;;  %v1189_v9 = vand.u32 4294901760, %v41_v6  ;;  %v1191_v10 = vand.u32 4294901760, %v56_v7  ;;  %v55_v12 = vld [vmem:[#allocation2 + $0xe0] sm:$0xff]  ;;  %v54_v14 = vld [vmem:[#allocation2 + $0xd8] sm:$0xff] }
  0x10   :  { %v1193_v11 = vand.u32 4294901760, %v40_v8  ;;  %v39_v13 = vld [vmem:[#allocation2 + $0x60] sm:$0xff]  ;;  %927 = vmatprep.subr.mxu0 %v1183_v3  ;;  %v1196_v15 = vand.u32 4294901760, %v55_v12  ;;  %v1200_v17 = vand.u32 4294901760, %v54_v14  ;;  %v1203_v18 = vsub.f32 %v58_v0, %v1183_v3  ;;  %v1205_v19 = vld [vmem:[#allocation2 + $0x58] sm:$0xff]  ;;  %v1207_v20 = vld [vmem:[#allocation2 + $0xd0] sm:$0xff] }
  0x11   :  { %v1198_v16 = vand.u32 4294901760, %v39_v13  ;;  %v1209_v21 = vld [vmem:[#allocation2 + $0x50] sm:$0xff]  ;;  %928 = vmatpush3.msra.mxu0 %v1185_v4  ;;  %v1213_v22 = vand.u32 4294901760, %v1205_v19  ;;  %v1216_v23 = vsub.f32 %v42_v1, %v1185_v4  ;;  %v1219_v24 = vand.u32 4294901760, %v1207_v20  ;;  %v1224_v26 = vld [vmem:[#allocation2 + $0xc8] sm:$0xff]  ;;  %v1228_v28 = vld [vmem:[#allocation2 + $0xc0] sm:$0xff] }
  0x12   :  { %v1222_v25 = vsub.f32 %v57_v2, %v1187_v5  ;;  %v1226_v27 = vld [vmem:[#allocation2 + $0x48] sm:$0xff]  ;;  %929 = vmatprep.subr.mxu0 %v1187_v5  ;;  %v1810_v29 = vand.u32 4294901760, %v1203_v18  ;;  %v1233_v30 = vand.u32 4294901760, %v1209_v21  ;;  %v1236_v31 = vsub.f32 %v41_v6, %v1189_v9  ;;  %v1250_v37 = vld [vmem:[#allocation2 + $0x40] sm:$0xff]  ;;  %v1274_v46 = vld [vmem:[#allocation2 + $0xb8] sm:$0xff] }
  0x13   :  { %v1239_v32 = vand.u32 4294901760, %v1224_v26  ;;  %930 = vmatpush3.msra.mxu0 %v1189_v9  ;;  %v1808_v33 = vand.u32 4294901760, %v1216_v23  ;;  %v1245_v35 = vsub.f32 %v56_v7, %v1191_v10  ;;  %v1248_v36 = vand.u32 4294901760, %v1226_v27  ;;  %v1284_v51 = vld [vmem:[#allocation2 + $0x38] sm:$0xff]  ;;  %v1291_v56 = vld [vmem:[#allocation2 + $0xb0] sm:$0xff]  ;;  %v1315_v2 = vld [vmem:[#allocation2 + $0xa8] sm:$0xff] }
  0x14   :  { %1865 = vst [vmem:[#allocation5_spill] sm:$0xff] %v1233_v30  ;;  %v1807_v34 = vand.u32 4294901760, %v1222_v25  ;;  %931 = vmatprep.subr.mxu0 %v1191_v10  ;;  %v287_v38 = vsub.f32 %v1203_v18, %v1810_v29  ;;  %v1805_v39 = vand.u32 4294901760, %v1236_v31  ;;  %v1258_v40 = vsub.f32 %v40_v8, %v1193_v11  ;;  %v1303_v61 = vld [vmem:[#allocation2 + $0x30] sm:$0xff] }
  0x15   :  { %1866 = vst [vmem:[#allocation6_spill] sm:$0xff] %v1239_v32  ;;  %1867 = vst [vmem:[#allocation7_spill] sm:$0xff] %v1248_v36  ;;  %v1261_v41 = vand.u32 4294901760, %v1228_v28  ;;  %932 = vmatpush3.msra.mxu0 %v1193_v11  ;;  %v175_v42 = vsub.f32 %v1216_v23, %v1808_v33  ;;  %v1803_v44 = vand.u32 4294901760, %v1245_v35  ;;  %v1272_v45 = vsub.f32 %v55_v12, %v1196_v15 }
  0x16   :  { %v294_v43 = vsub.f32 %v1222_v25, %v1807_v34  ;;  %933 = vmatprep.subr.mxu0 %v1196_v15  ;;  %v288_v47 = vand.u32 4294901760, %v287_v38  ;;  %v182_v48 = vsub.f32 %v1236_v31, %v1805_v39  ;;  %v1802_v49 = vand.u32 4294901760, %v1258_v40  ;;  %v1406_v39 = vld [vmem:[#allocation2 + $0x90] sm:$0xff] }
  0x17   :  { %1868 = vst [vmem:[#allocation8_spill] sm:$0xff] %v1261_v41  ;;  %v1282_v50 = vand.u32 4294901760, %v1250_v37  ;;  %934 = vmatpush3.msra.mxu0 %v1198_v16  ;;  %v176_v52 = vand.u32 4294901760, %v175_v42  ;;  %v301_v54 = vsub.f32 %v1245_v35, %v1803_v44  ;;  %v1800_v55 = vand.u32 4294901760, %v1272_v45  ;;  %v1416_v34 = vld [vmem:[#allocation2 + $0x10] sm:$0xff] }
  0x18   :  { %v295_v53 = vand.u32 4294901760, %v294_v43  ;;  %935 = vmatprep.subr.mxu0 %v1200_v17  ;;  %962 = vmatprep.subr.mxu1 %v288_v47  ;;  %v183_v57 = vand.u32 4294901760, %v182_v48  ;;  %v189_v58 = vsub.f32 %v1258_v40, %v1802_v49  ;;  %v1298_v59 = vsub.f32 %v39_v13, %v1198_v16  ;;  %v1326_v13 = vld [vmem:[#allocation2 + $0x28] sm:$0xff]  ;;  %v1393_v49 = vld [vmem:[#allocation2 + $0x18] sm:$0xff] }
  0x19   :  { %1869 = vst [vmem:[#allocation9_spill] sm:$0xff] %v1282_v50  ;;  %v1301_v60 = vand.u32 4294901760, %v1274_v46  ;;  %936 = vmatpush3.msra.mxu0 %v1213_v22  ;;  %963 = vmatpush3.msra.mxu1 %v176_v52  ;;  %v302_v62 = vand.u32 4294901760, %v301_v54  ;;  %v308_v63 = vsub.f32 %v1272_v45, %v1800_v55  ;;  %v1310_v0 = vsub.f32 %v54_v14, %v1200_v17 }
  0x1a   :  { %v1313_v1 = vand.u32 4294901760, %v1284_v51  ;;  %937 = vmatprep.subr.mxu0 %v1219_v24  ;;  %964 = vmatprep.subr.mxu1 %v295_v53  ;;  %v190_v6 = vand.u32 4294901760, %v189_v58  ;;  %v1798_v7 = vand.u32 4294901760, %v1298_v59  ;;  %v1321_v8 = vsub.f32 %v1205_v19, %v1213_v22 }
  0x1b   :  { %1870 = vst [vmem:[#allocation10_spill] sm:$0xff] %v1301_v60  ;;  %v1324_v12 = vand.u32 4294901760, %v1291_v56  ;;  %938 = vmatpush3.msra.mxu0 %v1233_v30  ;;  %965 = vmatpush3.msra.mxu1 %v183_v57  ;;  %v309_v14 = vand.u32 4294901760, %v308_v63  ;;  %v1797_v38 = vand.u32 4294901760, %v1310_v0  ;;  %v1332_v42 = vsub.f32 %v1207_v20, %v1219_v24  ;;  %v1349_v20 = vld [vmem:[#allocation2 + $0xa0] sm:$0xff] }
  0x1c   :  { %1871 = vst [vmem:[#allocation11_spill] sm:$0xff] %v1313_v1  ;;  %v1335_v43 = vand.u32 4294901760, %v1303_v61  ;;  %939 = vmatprep.subr.mxu0 %v1239_v32  ;;  %966 = vmatprep.subr.mxu1 %v302_v62  ;;  %v196_v19 = vsub.f32 %v1298_v59, %v1798_v7  ;;  %v1799_v47 = vand.u32 4294901760, %v1321_v8  ;;  %v1344_v48 = vsub.f32 %v1209_v21, %v1233_v30 }
  0x1d   :  { %1872 = vst [vmem:[#allocation12_spill] sm:$0xff] %v1324_v12  ;;  %v1347_v52 = vand.u32 4294901760, %v1315_v2  ;;  %940 = vmatpush3.msra.mxu0 %v1248_v36  ;;  %967 = vmatpush3.msra.mxu1 %v190_v6  ;;  %v315_v53 = vsub.f32 %v1310_v0, %v1797_v38  ;;  %v1801_v54 = vand.u32 4294901760, %v1332_v42  ;;  %v1358_v57 = vsub.f32 %v1224_v26, %v1239_v32  ;;  %v1372_v38 = vld [vmem:[#allocation2 + $0x20] sm:$0xff] }
  0x1e   :  { %1873 = vst [vmem:[#allocation13_spill] sm:$0xff] %v1335_v43  ;;  %v1361_v21 = vand.u32 4294901760, %v1326_v13  ;;  %941 = vmatprep.subr.mxu0 %v1261_v41  ;;  %968 = vmatprep.subr.mxu1 %v309_v14  ;;  %v197_v58 = vand.u32 4294901760, %v196_v19  ;;  %v203_v62 = vsub.f32 %v1321_v8, %v1799_v47  ;;  %v1804_v63 = vand.u32 4294901760, %v1344_v48  ;;  %v1382_v47 = vld [vmem:[#allocation2 + $0x98] sm:$0xff] }
  0x1f   :  { %1874 = vst [vmem:[#allocation14_spill] sm:$0xff] %v1347_v52  ;;  %v1370_v6 = vsub.f32 %v1226_v27, %v1248_v36  ;;  %942 = vmatpush3.msra.mxu0 %v1282_v50  ;;  %v316_v26 = vand.u32 4294901760, %v315_v53  ;;  %v322_v14 = vsub.f32 %v1332_v42, %v1801_v54  ;;  %v1806_v19 = vand.u32 4294901760, %v1358_v57 }
  0x20   :  { %1875 = vst [vmem:[#allocation15_spill] sm:$0xff] %v1361_v21  ;;  %v1380_v7 = vand.u32 4294901760, %v1349_v20  ;;  %969 = vmatpush3.msra.mxu1 %v197_v58  ;;  %943 = vmatprep.subr.mxu0 %v1301_v60  ;;  %v204_v27 = vand.u32 4294901760, %v203_v62  ;;  %v210_v55 = vsub.f32 %v1344_v48, %v1804_v63  ;;  %v1391_v54 = vsub.f32 %v1228_v28, %v1261_v41 }
  0x21   :  { %v1809_v53 = vand.u32 4294901760, %v1370_v6  ;;  %970 = vmatprep.subr.mxu1 %v316_v26  ;;  %944 = vmatpush3.msra.mxu0 %v1313_v1  ;;  %v323_v44 = vand.u32 4294901760, %v322_v14  ;;  %v329_v58 = vsub.f32 %v1358_v57, %v1806_v19  ;;  %v1400_v62 = vand.u32 4294901760, %v1372_v38 }
  0x22   :  { %1876 = vst [vmem:[#allocation16_spill] sm:$0xff] %v1380_v7  ;;  %v1404_v63 = vsub.f32 %v1250_v37, %v1282_v50  ;;  %971 = vmatpush3.msra.mxu1 %v204_v27  ;;  %945 = vmatprep.subr.mxu0 %v1324_v12  ;;  %v211_v28 = vand.u32 4294901760, %v210_v55  ;;  %v1813_v14 = vand.u32 4294901760, %v1391_v54  ;;  %v1414_v19 = vand.u32 4294901760, %v1382_v47 }
  0x23   :  { %1877 = vst [vmem:[#allocation17_spill] sm:$0xff] %v1400_v62  ;;  %v217_v26 = vsub.f32 %v1370_v6, %v1809_v53  ;;  %972 = vmatprep.subr.mxu1 %v323_v44  ;;  %946 = vmatpush3.msra.mxu0 %v1335_v43  ;;  %v330_v37 = vand.u32 4294901760, %v329_v58  ;;  %v1422_v55 = vsub.f32 %v1274_v46, %v1301_v60  ;;  %v1425_v33 = vand.u32 4294901760, %v1393_v49  ;;  %v1427_v53 = vld [vmem:[#allocation2 + $0x88] sm:$0xff] }
  0x24   :  { %v1816_v27 = vand.u32 4294901760, %v1404_v63  ;;  %973 = vmatpush3.msra.mxu1 %v211_v28  ;;  %947 = vmatprep.subr.mxu0 %v1347_v52  ;;  %v336_v44 = vsub.f32 %v1391_v54, %v1813_v14  ;;  %v1435_v58 = vsub.f32 %v1284_v51, %v1313_v1  ;;  %v1438_v46 = vand.u32 4294901760, %v1406_v39  ;;  %v1452_v51 = vld [vmem:[#allocation2 + $0x8] sm:$0xff] }
  0x25   :  { %1878 = vst [vmem:[#allocation18_spill] sm:$0xff] %v1425_v33  ;;  %v218_v29 = vand.u32 4294901760, %v217_v26  ;;  %974 = vmatprep.subr.mxu1 %v330_v37  ;;  %948 = vmatpush3.msra.mxu0 %v1361_v21  ;;  %v1447_v60 = vsub.f32 %v1291_v56, %v1324_v12  ;;  %v1450_v14 = vand.u32 4294901760, %v1416_v34  ;;  %v1461_v26 = vand.u32 4294901760, %v1427_v53  ;;  %v1463_v56 = vld [vmem:[#allocation2 + $0x80] sm:$0xff] }
  0x26   :  { %1879 = vst [vmem:[#allocation19_spill] sm:$0xff] %v1438_v46  ;;  %v224_v28 = vsub.f32 %v1404_v63, %v1816_v27  ;;  %949 = vmatprep.subr.mxu0 %v1380_v7  ;;  %v337_v37 = vand.u32 4294901760, %v336_v44  ;;  %v1458_v27 = vsub.f32 %v1303_v61, %v1335_v43  ;;  %v1883_v50 = vand.u32 4294901760, %v1422_v55  ;;  %v1486_v44 = vld [vmem:[#allocation2] sm:$0xff] }
  0x27   :  { %1880 = vst [vmem:[#allocation20_spill] sm:$0xff] %v1450_v14  ;;  %975 = vmatpush3.msra.mxu1 %v218_v29  ;;  %1882 = vst [vmem:[#allocation22_spill] sm:$0xff] %v1461_v26  ;;  %950 = vmatpush3.msra.mxu0 %v1400_v62  ;;  %v1472_v1 = vsub.f32 %v1315_v2, %v1347_v52  ;;  %v1885_v61 = vand.u32 4294901760, %v1435_v58  ;;  %v1494_v41 = vand.u32 4294901760, %v1463_v56 }
  0x28   :  { %1881 = vst [vmem:[#allocation21_spill] sm:$0xff] %v1458_v27  ;;  %v225_v12 = vand.u32 4294901760, %v224_v28  ;;  %v343_v29 = vsub.f32 %v1422_v55, %v1883_v50  ;;  %976 = vmatprep.subr.mxu1 %v337_v37  ;;  %951 = vmatprep.subr.mxu0 %v1414_v19  ;;  %v1480_v28 = vand.u32 4294901760, %v1452_v51  ;;  %v1484_v50 = vsub.f32 %v1326_v13, %v1361_v21  ;;  %v26_v13 = vld [vmem:[%s1794_s0 + $0x8] sm:$0xff] }
  0x29   :  { %1884 = vst [vmem:[#allocation23_spill] sm:$0xff] %v1472_v1  ;;  %v231_v43 = vsub.f32 %v1435_v58, %v1885_v61  ;;  %952 = vmatpush3.msra.mxu0 %v1425_v33  ;;  %v1886_v37 = vand.u32 4294901760, %v1447_v60  ;;  %v25_v61 = vld [vmem:[%s1794_s0] sm:$0xff]  ;;  %v1520_v36 = vsub.f32 %v1372_v38, %v1400_v62  ;;  %v1533_v38 = vsub.f32 %v1382_v47, %v1414_v19 }
  0x2a   :  { %977 = vmatpush3.msra.mxu1 %v225_v12  ;;  %v344_v2 = vand.u32 4294901760, %v343_v29  ;;  %953 = vmatprep.subr.mxu0 %v1438_v46  ;;  %v1887_v12 = vand.u32 4294901760, %v1458_v27 }
  0x2b   :  { %v350_v52 = vsub.f32 %v1447_v60, %v1886_v37  ;;  %v232_v21 = vand.u32 4294901760, %v231_v43  ;;  %v1506_v37 = vsub.f32 %v1349_v20, %v1380_v7  ;;  %954 = vmatpush3.msra.mxu0 %v1450_v14  ;;  %v1888_v43 = vand.u32 4294901760, %v1472_v1 }
  0x2c   :  { %v238_v29 = vsub.f32 %v1458_v27, %v1887_v12  ;;  %978 = vmatprep.subr.mxu1 %v344_v2  ;;  %v1516_v12 = vand.u32 4294901760, %v1486_v44  ;;  %955 = vmatprep.subr.mxu0 %v1461_v26  ;;  %v1889_v2 = vand.u32 4294901760, %v1484_v50  ;;  %v1527_v27 = vand.u32 4294901760, %v26_v13 }
  0x2d   :  { %v351_v32 = vand.u32 4294901760, %v350_v52  ;;  %v357_v30 = vsub.f32 %v1472_v1, %v1888_v43  ;;  %979 = vmatpush3.msra.mxu1 %v232_v21  ;;  %v1841_v7 = vand.u32 4294901760, %v1506_v37  ;;  %956 = vmatpush3.msra.mxu0 %v1480_v28  ;;  %v1842_v1 = vand.u32 4294901760, %v1520_v36 }
  0x2e   :  { %v239_v20 = vand.u32 4294901760, %v238_v29  ;;  %v245_v52 = vsub.f32 %v1484_v50, %v1889_v2  ;;  %1890 = vst [vmem:[#allocation24_spill] sm:$0xff] %v1527_v27  ;;  %v1535_v21 = vand.u32 4294901760, %v25_v61  ;;  %957 = vmatprep.subr.mxu0 %v1494_v41  ;;  %396 = vmatprep.mubr.f32.mxu1 %v1527_v27 }
  0x2f   :  { %980 = vmatprep.subr.mxu1 %v351_v32  ;;  %v358_v43 = vand.u32 4294901760, %v357_v30  ;;  %v364_v2 = vsub.f32 %v1506_v37, %v1841_v7  ;;  %v1542_v30 = vsub.f32 %v26_v13, %v1527_v27  ;;  %v1546_v32 = vsub.f32 %v1393_v49, %v1425_v33  ;;  %958 = vmatpush3.msra.mxu0 %v1516_v12 }
  0x30   :  { %1891 = vst [vmem:[#allocation25_spill] sm:$0xff] %v1535_v21  ;;  %981 = vmatpush3.msra.mxu1 %v239_v20  ;;  %v246_v29 = vand.u32 4294901760, %v245_v52  ;;  %v252_v47 = vsub.f32 %v1520_v36, %v1842_v1  ;;  %v1554_v52 = vsub.f32 %v25_v61, %v1535_v21  ;;  %v1558_v13 = vsub.f32 %v1406_v39, %v1438_v46 }
  0x31   :  { %982 = vmatprep.subr.mxu1 %v358_v43  ;;  %v365_v7 = vand.u32 4294901760, %v364_v2  ;;  %v1847_v49 = vand.u32 4294901760, %v1542_v30  ;;  %997 = vmatprep.subr.mxu0 %v1203_v18  ;;  %v1850_v43 = vand.u32 4294901760, %v1546_v32  ;;  %v1565_v1 = vsub.f32 %v1416_v34, %v1450_v14 }
  0x32   :  { %983 = vmatpush3.msra.mxu1 %v246_v29  ;;  %v253_v20 = vand.u32 4294901760, %v252_v47  ;;  %v1892_v61 = vand.u32 4294901760, %v1533_v38  ;;  %v1893_v29 = vand.u32 4294901760, %v1554_v52  ;;  %v1894_v27 = vand.u32 4294901760, %v1558_v13 }
  0x33   :  { %984 = vmatprep.subr.mxu1 %v365_v7  ;;  %v158_v2 = vsub.f32 %v1542_v30, %v1847_v49  ;;  %v259_v34 = vsub.f32 %v1546_v32, %v1850_v43  ;;  %v1592_v14 = vsub.f32 %v1452_v51, %v1480_v28  ;;  %v1896_v46 = vand.u32 4294901760, %v1565_v1 }
  0x34   :  { %v371_v33 = vsub.f32 %v1533_v38, %v1892_v61  ;;  %v1582_v61 = vsub.f32 %v1427_v53, %v1461_v26  ;;  %985 = vmatpush3.msra.mxu1 %v253_v20  ;;  %v164_v7 = vsub.f32 %v1554_v52, %v1893_v29  ;;  %v378_v49 = vsub.f32 %v1558_v13, %v1894_v27 }
  0x35   :  { %1895 = vst [vmem:[#allocation26_spill] sm:$0xff] %v1592_v14  ;;  %v159_v43 = vand.u32 4294901760, %v158_v2  ;;  %v260_v47 = vand.u32 4294901760, %v259_v34  ;;  %v266_v53 = vsub.f32 %v1565_v1, %v1896_v46  ;;  %v1857_v29 = vand.u32 4294901760, %v1592_v14 }
  0x36   :  { %v372_v39 = vand.u32 4294901760, %v371_v33  ;;  %v1858_v33 = vand.u32 4294901760, %v1582_v61  ;;  %v165_v20 = vand.u32 4294901760, %v164_v7  ;;  %v379_v26 = vand.u32 4294901760, %v378_v49 }
  0x37   :  { %v1601_v27 = vsub.f32 %v1463_v56, %v1494_v41  ;;  %160 = vmatprep.mubr.f32.mxu0 %v159_v43  ;;  %v267_v51 = vand.u32 4294901760, %v266_v53  ;;  %v1608_v46 = vsub.f32 %v1486_v44, %v1516_v12  ;;  %v273_v49 = vsub.f32 %v1592_v14, %v1857_v29  ;;  %v1899_v53 = vld [vmem:[#allocation21_spill] sm:$0xff]  ;;  %v1912_v29 = vld [vmem:[#allocation16_spill] sm:$0xff] }
  0x38   :  { %986 = vmatprep.subr.mxu1 %v372_v39  ;;  %v385_v2 = vsub.f32 %v1582_v61, %v1858_v33  ;;  %166 = vmatmul.mubr.f32.vlgmr.msra.gmra.mxu0 %v165_v20  ;;  %v1900_v20 = vld [vmem:[#allocation5_spill] sm:$0xff]  ;;  %v1913_v33 = vand.u32 4294901760, %v1203_v18  ;;  %v1921_v18 = vand.u32 4294901760, %v1245_v35 }
  0x39   :  { %1897 = vst [vmem:[#allocation27_spill] sm:$0xff] %v1601_v27  ;;  %987 = vmatpush3.msra.mxu1 %v260_v47  ;;  %1898 = vst [vmem:[#allocation28_spill] sm:$0xff] %v1608_v46  ;;  %v1856_v56 = vand.u32 4294901760, %v1601_v27  ;;  %998 = vmatpush3.msra.mxu0 %v1216_v23  ;;  %v1855_v39 = vand.u32 4294901760, %v1608_v46  ;;  %v274_v34 = vand.u32 4294901760, %v273_v49  ;;  %v1903_v49 = vld [vmem:[#allocation7_spill] sm:$0xff] }
  0x3a   :  { %988 = vmatprep.subr.mxu1 %v379_v26  ;;  %v386_v43 = vand.u32 4294901760, %v385_v2  ;;  %999 = vmatprep.subr.mxu0 %v1222_v25  ;;  %v1902_v2 = vld [vmem:[#allocation6_spill] sm:$0xff] }
  0x3b   :  { %989 = vmatpush3.msra.mxu1 %v267_v51  ;;  %v392_v44 = vsub.f32 %v1601_v27, %v1856_v56  ;;  %533 = vmatprep.mubr.f32.mxu0 %v1542_v30  ;;  %v280_v26 = vsub.f32 %v1608_v46, %v1855_v39  ;;  %v1901_v51 = vld [vmem:[#allocation23_spill] sm:$0xff]  ;;  %v1910_v39 = vld [vmem:[#allocation14_spill] sm:$0xff] }
  0x3c   :  { %1000 = vmatpush3.msra.mxu0 %v1236_v31  ;;  %990 = vmatprep.subr.mxu1 %v386_v43  ;;  %v1904_v43 = vld [vmem:[#allocation8_spill] sm:$0xff]  ;;  %v1911_v56 = vld [vmem:[#allocation15_spill] sm:$0xff] }
  0x3d   :  { %1001 = vmatprep.subr.mxu0 %v1245_v35  ;;  %991 = vmatpush3.msra.mxu1 %v274_v34  ;;  %v393_v47 = vand.u32 4294901760, %v392_v44  ;;  %v281_v7 = vand.u32 4294901760, %v280_v26  ;;  %v1905_v34 = vld [vmem:[#allocation9_spill] sm:$0xff]  ;;  %v1906_v44 = vld [vmem:[#allocation10_spill] sm:$0xff]  ;;  %v1907_v26 = vld [vmem:[#allocation11_spill] sm:$0xff]  ;;  %v1926_v35 = vand.u32 4294901760, %v1554_v52 }
  0x3e   :  { %1002 = vmatpush3.msra.mxu0 %v1258_v40 }
  0x3f   :  { %992 = vmatprep.subr.mxu1 %v393_v47  ;;  %1003 = vmatprep.subr.mxu0 %v1272_v45  ;;  %v1908_v47 = vld [vmem:[#allocation12_spill] sm:$0xff] }
  0x40   :  { %993 = vmatpush3.msra.mxu1 %v281_v7  ;;  %1004 = vmatpush3.msra.mxu0 %v1298_v59  ;;  %v1909_v7 = vld [vmem:[#allocation13_spill] sm:$0xff] }
  0x41   :  { %398 = vmatmul.mubr.f32.vlgmr.msra.gmra.mxu1 %v1535_v21  ;;  %1005 = vmatprep.subr.mxu0 %v1310_v0  ;;  %v1914_v21 = vld [vmem:[#allocation18_spill] sm:$0xff] }
  0x42   :  { %1032 = vmatprep.subr.mxu1 %v1183_v3  ;;  %1006 = vmatpush3.msra.mxu0 %v1321_v8 }
  0x43   :  { %1033 = vmatpush3.msra.mxu1 %v1185_v4  ;;  %1007 = vmatprep.subr.mxu0 %v1332_v42 }
  0x44   :  { %1034 = vmatprep.subr.mxu1 %v1187_v5  ;;  %1008 = vmatpush3.msra.mxu0 %v1344_v48 }
  0x45   :  { %1035 = vmatpush3.msra.mxu1 %v1189_v9  ;;  %1009 = vmatprep.subr.mxu0 %v1358_v57 }
  0x46   :  { %1036 = vmatprep.subr.mxu1 %v1191_v10  ;;  %1010 = vmatpush3.msra.mxu0 %v1370_v6 }
  0x47   :  { %1037 = vmatpush3.msra.mxu1 %v1193_v11  ;;  %1011 = vmatprep.subr.mxu0 %v1391_v54 }
  0x48   :  { %1038 = vmatprep.subr.mxu1 %v1196_v15  ;;  %1012 = vmatpush3.msra.mxu0 %v1404_v63 }
  0x49   :  { %1039 = vmatpush3.msra.mxu1 %v1198_v16  ;;  %1013 = vmatprep.subr.mxu0 %v1422_v55 }
  0x4a   :  { %1040 = vmatprep.subr.mxu1 %v1200_v17  ;;  %1014 = vmatpush3.msra.mxu0 %v1435_v58 }
  0x4b   :  { %1041 = vmatpush3.msra.mxu1 %v1213_v22  ;;  %1015 = vmatprep.subr.mxu0 %v1447_v60 }
  0x4c   :  { %1042 = vmatprep.subr.mxu1 %v1219_v24  ;;  %1016 = vmatpush3.msra.mxu0 %v1899_v53 }
  0x4d   :  { %1043 = vmatpush3.msra.mxu1 %v1900_v20  ;;  %1017 = vmatprep.subr.mxu0 %v1901_v51 }
  0x4e   :  { %1044 = vmatprep.subr.mxu1 %v1902_v2  ;;  %1018 = vmatpush3.msra.mxu0 %v1484_v50 }
  0x4f   :  { %1045 = vmatpush3.msra.mxu1 %v1903_v49  ;;  %1019 = vmatprep.subr.mxu0 %v1506_v37 }
  0x50   :  { %1046 = vmatprep.subr.mxu1 %v1904_v43  ;;  %1020 = vmatpush3.msra.mxu0 %v1520_v36 }
  0x51   :  { %1047 = vmatpush3.msra.mxu1 %v1905_v34  ;;  %1021 = vmatprep.subr.mxu0 %v1533_v38 }
  0x52   :  { %1048 = vmatprep.subr.mxu1 %v1906_v44  ;;  %1022 = vmatpush3.msra.mxu0 %v1546_v32 }
  0x53   :  { %1049 = vmatpush3.msra.mxu1 %v1907_v26  ;;  %1023 = vmatprep.subr.mxu0 %v1558_v13 }
  0x54   :  { %1050 = vmatprep.subr.mxu1 %v1908_v47  ;;  %1024 = vmatpush3.msra.mxu0 %v1565_v1 }
  0x55   :  { %1051 = vmatpush3.msra.mxu1 %v1909_v7  ;;  %1025 = vmatprep.subr.mxu0 %v1582_v61 }
  0x56   :  { %1052 = vmatprep.subr.mxu1 %v1910_v39  ;;  %1026 = vmatpush3.msra.mxu0 %v1592_v14  ;;  %v1915_v14 = vand.u32 4294901760, %v1216_v23  ;;  %v1922_v23 = vand.u32 4294901760, %v1258_v40  ;;  %v1928_v40 = vand.u32 4294901760, %v1321_v8  ;;  %v1944_v8 = vand.u32 4294901760, %v1546_v32 }
  0x57   :  { %1053 = vmatpush3.msra.mxu1 %v1911_v56  ;;  %1027 = vmatprep.subr.mxu0 %v1601_v27  ;;  %v1916_v56 = vld [vmem:[#allocation19_spill] sm:$0xff]  ;;  %v1920_v27 = vld [vmem:[#allocation22_spill] sm:$0xff] }
  0x58   :  { %1054 = vmatprep.subr.mxu1 %v1912_v29  ;;  %1028 = vmatpush3.msra.mxu0 %v1608_v46  ;;  %v1917_v29 = vand.u32 4294901760, %v1222_v25  ;;  %v1918_v46 = vld [vmem:[#allocation20_spill] sm:$0xff]  ;;  %v1923_v25 = vand.u32 4294901760, %v1272_v45  ;;  %v1929_v45 = vand.u32 4294901760, %v1332_v42  ;;  %v1945_v42 = vand.u32 4294901760, %v1558_v13 }
  0x59   :  { %1055 = vmatpush3.msra.mxu1 %v1400_v62  ;;  %536 = vmatmul.mubr.f32.vlgmr.msra.gmra.mxu0 %v1554_v52  ;;  %v1919_v62 = vand.u32 4294901760, %v1236_v31  ;;  %v1924_v31 = vand.u32 4294901760, %v1542_v30  ;;  %v1958_v30 = vld [vmem:[#allocation25_spill] sm:$0xff] }
  0x5a   :  { %1056 = vmatprep.subr.mxu1 %v1414_v19  ;;  %1067 = vmatprep.subr.mxu0 %v1913_v33 }
  0x5b   :  { %1057 = vmatpush3.msra.mxu1 %v1914_v21  ;;  %1068 = vmatpush3.msra.mxu0 %v1915_v14  ;;  %v1927_v14 = vand.u32 4294901760, %v1310_v0  ;;  %v1931_v0 = vand.u32 4294901760, %v1358_v57 }
  0x5c   :  { %1058 = vmatprep.subr.mxu1 %v1916_v56  ;;  %1069 = vmatprep.subr.mxu0 %v1917_v29 }
  0x5d   :  { %1059 = vmatpush3.msra.mxu1 %v1918_v46  ;;  %1070 = vmatpush3.msra.mxu0 %v1919_v62  ;;  %v1925_v62 = vand.u32 4294901760, %v1298_v59  ;;  %v1930_v59 = vand.u32 4294901760, %v1344_v48  ;;  %v1947_v48 = vand.u32 4294901760, %v1582_v61 }
  0x5e   :  { %1060 = vmatprep.subr.mxu1 %v1920_v27  ;;  %1071 = vmatprep.subr.mxu0 %v1921_v18 }
  0x5f   :  { %1061 = vmatpush3.msra.mxu1 %v1480_v28  ;;  %1072 = vmatpush3.msra.mxu0 %v1922_v23 }
  0x60   :  { %1062 = vmatprep.subr.mxu1 %v1494_v41  ;;  %1073 = vmatprep.subr.mxu0 %v1923_v25 }
  0x61   :  { %1063 = vmatpush3.msra.mxu1 %v1516_v12  ;;  %640 = vmatprep.mubr.f32.mxu1 %v1924_v31 }
  0x62   :  { %1074 = vmatpush3.msra.mxu0 %v1925_v62  ;;  %644 = vmatmul.mubr.f32.vlgmr.msra.gmra.mxu1 %v1926_v35 }
  0x63   :  { %1075 = vmatprep.subr.mxu0 %v1927_v14  ;;  %1102 = vmatprep.subr.mxu1 %v1183_v3  ;;  %v1932_v3 = vand.u32 4294901760, %v1370_v6  ;;  %v1951_v6 = vld [vmem:[#allocation27_spill] sm:$0xff] }
  0x64   :  { %1076 = vmatpush3.msra.mxu0 %v1928_v40  ;;  %1103 = vmatpush3.msra.mxu1 %v1185_v4  ;;  %v1933_v4 = vand.u32 4294901760, %v1391_v54  ;;  %v1948_v54 = vld [vmem:[#allocation26_spill] sm:$0xff] }
  0x65   :  { %1077 = vmatprep.subr.mxu0 %v1929_v45  ;;  %1104 = vmatprep.subr.mxu1 %v1187_v5  ;;  %v1934_v5 = vand.u32 4294901760, %v1404_v63  ;;  %v1949_v57 = vand.u32 4294901760, %v1948_v54  ;;  %v1950_v63 = vld [vmem:[#allocation15_spill] sm:$0xff] }
  0x66   :  { %1078 = vmatpush3.msra.mxu0 %v1930_v59  ;;  %1105 = vmatpush3.msra.mxu1 %v1189_v9  ;;  %v1935_v9 = vand.u32 4294901760, %v1422_v55  ;;  %v1952_v55 = vand.u32 4294901760, %v1951_v6 }
  0x67   :  { %1079 = vmatprep.subr.mxu0 %v1931_v0  ;;  %1106 = vmatprep.subr.mxu1 %v1191_v10  ;;  %v1936_v10 = vand.u32 4294901760, %v1435_v58  ;;  %v1953_v58 = vld [vmem:[#allocation16_spill] sm:$0xff] }
  0x68   :  { %1080 = vmatpush3.msra.mxu0 %v1932_v3  ;;  %1107 = vmatpush3.msra.mxu1 %v1193_v11  ;;  %v1937_v11 = vand.u32 4294901760, %v1447_v60  ;;  %v1943_v60 = vand.u32 4294901760, %v1533_v38  ;;  %v1957_v38 = vld [vmem:[#allocation17_spill] sm:$0xff] }
  0x69   :  { %1081 = vmatprep.subr.mxu0 %v1933_v4  ;;  %1108 = vmatprep.subr.mxu1 %v1196_v15  ;;  %v1938_v15 = vand.u32 4294901760, %v1899_v53 }
  0x6a   :  { %1082 = vmatpush3.msra.mxu0 %v1934_v5  ;;  %1109 = vmatpush3.msra.mxu1 %v1198_v16  ;;  %v1939_v16 = vand.u32 4294901760, %v1901_v51 }
  0x6b   :  { %1083 = vmatprep.subr.mxu0 %v1935_v9  ;;  %1110 = vmatprep.subr.mxu1 %v1200_v17  ;;  %v1940_v17 = vand.u32 4294901760, %v1484_v50  ;;  %v1954_v50 = vld [vmem:[#allocation28_spill] sm:$0xff] }
  0x6c   :  { %1084 = vmatpush3.msra.mxu0 %v1936_v10  ;;  %1111 = vmatpush3.msra.mxu1 %v1213_v22  ;;  %v1941_v22 = vand.u32 4294901760, %v1506_v37  ;;  %v1956_v37 = vld [vmem:[#allocation24_spill] sm:$0xff] }
  0x6d   :  { %1085 = vmatprep.subr.mxu0 %v1937_v11  ;;  %1112 = vmatprep.subr.mxu1 %v1219_v24  ;;  %v1942_v24 = vand.u32 4294901760, %v1520_v36  ;;  %v1946_v36 = vand.u32 4294901760, %v1565_v1  ;;  %v1955_v1 = vand.u32 4294901760, %v1954_v50 }
  0x6e   :  { %1086 = vmatpush3.msra.mxu0 %v1938_v15  ;;  %1113 = vmatpush3.msra.mxu1 %v1900_v20 }
  0x6f   :  { %1087 = vmatprep.subr.mxu0 %v1939_v16  ;;  %1114 = vmatprep.subr.mxu1 %v1902_v2 }
  0x70   :  { %1088 = vmatpush3.msra.mxu0 %v1940_v17  ;;  %1115 = vmatpush3.msra.mxu1 %v1903_v49 }
  0x71   :  { %1089 = vmatprep.subr.mxu0 %v1941_v22  ;;  %1116 = vmatprep.subr.mxu1 %v1904_v43 }
  0x72   :  { %1090 = vmatpush3.msra.mxu0 %v1942_v24  ;;  %1117 = vmatpush3.msra.mxu1 %v1905_v34 }
  0x73   :  { %1091 = vmatprep.subr.mxu0 %v1943_v60  ;;  %1118 = vmatprep.subr.mxu1 %v1906_v44 }
  0x74   :  { %1092 = vmatpush3.msra.mxu0 %v1944_v8  ;;  %1119 = vmatpush3.msra.mxu1 %v1907_v26 }
  0x75   :  { %1093 = vmatprep.subr.mxu0 %v1945_v42  ;;  %1120 = vmatprep.subr.mxu1 %v1908_v47 }
  0x76   :  { %1094 = vmatpush3.msra.mxu0 %v1946_v36  ;;  %1121 = vmatpush3.msra.mxu1 %v1909_v7 }
  0x77   :  { %1095 = vmatprep.subr.mxu0 %v1947_v48  ;;  %1122 = vmatprep.subr.mxu1 %v1910_v39 }
  0x78   :  { %1096 = vmatpush3.msra.mxu0 %v1949_v57  ;;  %1123 = vmatpush3.msra.mxu1 %v1950_v63 }
  0x79   :  { %1097 = vmatprep.subr.mxu0 %v1952_v55  ;;  %1124 = vmatprep.subr.mxu1 %v1953_v58 }
  0x7a   :  { %1098 = vmatpush3.msra.mxu0 %v1955_v1  ;;  %810 = vmatprep.mubr.f32.mxu0 %v1956_v37 }
  0x7b   :  { %1125 = vmatpush3.msra.mxu1 %v1957_v38  ;;  %812 = vmatmul.mubr.f32.vlgmr.msra.gmra.mxu0 %v1958_v30 }
  0x7c   :  { %1126 = vmatprep.subr.mxu1 %v1414_v19  ;;  %914 = vmatprep.mubr.f32.mxu1 %v1956_v37 }
  0x7d   :  { %1127 = vmatpush3.msra.mxu1 %v1914_v21 }
  0x7e   :  { %1128 = vmatprep.subr.mxu1 %v1916_v56 }
  0x7f   :  { %1129 = vmatpush3.msra.mxu1 %v1918_v46 }
  0x80   :  { %1130 = vmatprep.subr.mxu1 %v1920_v27 }
  0x81   :  { %1131 = vmatpush3.msra.mxu1 %v1480_v28 }
  0x82   :  { %1132 = vmatprep.subr.mxu1 %v1494_v41 }
  0x83   :  { %1133 = vmatpush3.msra.mxu1 %v1516_v12 }
  0x84   :  { %916 = vmatmul.mubr.f32.vlgmr.msra.gmra.mxu1 %v1958_v30 }
  0xf8   :  { %v959_v32 = vpop.f32.mrf.mxu0 }
  0xfa   :  { %v960_v19 = vpop.f32.mrf.mxu0 }
  0xfb   :  { %v961_v39 = vadd.f32 %v960_v19, %v959_v32 }
 0x101   :  { %v994_v52 = vpop.f32.mrf.mxu1 }
 0x103   :  { %v995_v61 = vpop.f32.mrf.mxu1 }
 0x104   :  { %v996_v56 = vadd.f32 %v995_v61, %v994_v52 }
 0x106   :  { %v400_v28 = vadd.f32 %v996_v56, %v961_v39 }
 0x119   :  { %v1029_v13 = vpop.f32.mrf.mxu0 }
 0x11b   :  { %v1030_v21 = vpop.f32.mrf.mxu0 }
 0x11c   :  { %v1031_v27 = vadd.f32 %v1030_v21, %v1029_v13 }
 0x11e   :  { %v538_v41 = vadd.f32 %v1031_v27, %v400_v28 }
 0x122   :  { %v1064_v33 = vpop.f32.mrf.mxu1 }
 0x124   :  { %v1065_v46 = vpop.f32.mrf.mxu1 }
 0x125   :  { %v1066_v20 = vadd.f32 %v1065_v46, %v1064_v33 }
 0x127   :  { %v646_v2 = vadd.f32 %v1066_v20, %v538_v41 }
 0x13b   :  { %v1099_v29 = vpop.f32.mrf.mxu0 }
 0x13d   :  { %v1100_v53 = vpop.f32.mrf.mxu0 }
 0x13e   :  { %v1101_v51 = vadd.f32 %v1100_v53, %v1099_v29 }
 0x140   :  { %v814_v43 = vadd.f32 %v1101_v51, %v646_v2 }
 0x144   :  { %v1134_v12 = vpop.f32.mrf.mxu1 }
 0x146   :  { %v1135_v49 = vpop.f32.mrf.mxu1 }
 0x147   :  { %v1136_v34 = vadd.f32 %v1135_v49, %v1134_v12 }
 0x149   :  { %v918_v44 = vadd.f32 %v1136_v34, %v814_v43 }
 0x14b   :  { %921 = vst [vmem:[%s1796_s2] sm:$0xff] %v918_v44 }
 0x14c   :  { %926 = vsyncpa [#allocation3], 1 }

</bundles_post_ra>
